<compile_context>
chip_gen: v7x
topology: tpu7x:2x2x1
jax: 0.10.0
libtpu: 0.0.40
codegen_flags: <defaults>
</compile_context>

<pallas_src>
import functools

import jax
import jax.numpy as jnp
from jax.experimental import pallas as pl
from jax.experimental.pallas import tpu as pltpu


def _lstm_kernel(x_ref, wih_ref, whh_ref, b_ref, fcw_ref, fcb_ref,
                 h0_ref, c0_ref,
                 out_ref, hout_ref, cout_ref,
                 *, seq_len, batch, hidden_size):
    T, B, H = seq_len, batch, hidden_size

    wih = wih_ref[...]                       # (H, 4H) bf16
    whh = whh_ref[...]                       # (H, 4H) bf16
    x2 = x_ref[...]                          # (T*B, H) bf16, time-major rows

    # Hoisted input projection for ALL timesteps + bias (added once, hoisted).
    x_proj = (jnp.dot(x2, wih, preferred_element_type=jnp.float32)
              + b_ref[...])                  # (T*B, 4H) f32

    h = h0_ref[...]                          # (B, H) f32 state carry
    c = c0_ref[...]                          # (B, H) f32

    # Fully-unrolled static time loop: each step is one small recurrent matmul
    # plus VPU/EUP gate math; PyTorch gate order (i, f, g, o).
    for t in range(T):
        gates = (x_proj[t * B:(t + 1) * B, :]
                 + jnp.dot(h.astype(jnp.bfloat16), whh,
                           preferred_element_type=jnp.float32))   # (B, 4H)
        i_g = jax.nn.sigmoid(gates[:, 0 * H:1 * H])
        f_g = jax.nn.sigmoid(gates[:, 1 * H:2 * H])
        g_g = jnp.tanh(gates[:, 2 * H:3 * H])
        o_g = jax.nn.sigmoid(gates[:, 3 * H:4 * H])
        c = f_g * c + i_g * g_g
        h = o_g * jnp.tanh(c)

    # fc + log_softmax epilogue on the last-step hidden (lane-padded to 128;
    # pad logits are -1e30 so they contribute 0 to the softmax sum).
    logits = (jnp.dot(h.astype(jnp.bfloat16), fcw_ref[...],
                      preferred_element_type=jnp.float32)
              + fcb_ref[...])                                     # (B, O_pad)
    m = jnp.max(logits, axis=1, keepdims=True)
    shifted = logits - m
    lse = jnp.log(jnp.sum(jnp.exp(shifted), axis=1, keepdims=True))
    out_ref[...] = shifted - lse
    hout_ref[...] = h
    cout_ref[...] = c


def simple_lstm_forward(tokens, hidden, params):
    """tokens: int32 (B, T); hidden: (h0, c0), each (num_layers=1, B, H)."""
    emb_table, w_ih, w_hh, b_ih, b_hh, fc_w, fc_b = (
        params["embedding"], params["w_ih"], params["w_hh"],
        params["b_ih"], params["b_hh"], params["fc_w"], params["fc_b"])
    h0, c0 = hidden
    B, T = tokens.shape
    H = emb_table.shape[1]
    O = fc_w.shape[0]
    O_pad = ((O + 127) // 128) * 128

    # Glue: embedding gather directly into time-major layout (only the tiny
    # token matrix is transposed; the big activation tensor is never
    # transposed / round-tripped through HBM). Reshape is contiguous -> free.
    x = jnp.take(emb_table.astype(jnp.bfloat16), tokens.T, axis=0)   # (T, B, H)
    x2 = x.reshape(T * B, H)                                         # (T*B, H)

    wih_t = w_ih.T.astype(jnp.bfloat16)                    # (H, 4H)
    whh_t = w_hh.T.astype(jnp.bfloat16)                    # (H, 4H)
    bias = (b_ih + b_hh).reshape(1, 4 * H).astype(jnp.float32)

    # Lane-dense padded fc: pad columns get weight 0 / bias -1e30 -> logits
    # of -1e30, which vanish under log_softmax and are sliced off below.
    fcw_pad = jnp.zeros((H, O_pad), jnp.bfloat16).at[:, :O].set(
        fc_w.T.astype(jnp.bfloat16))
    fcb_pad = jnp.full((1, O_pad), -1e30, jnp.float32).at[0, :O].set(
        fc_b.astype(jnp.float32))

    h0_2d = h0[0].astype(jnp.float32)                      # (B, H)
    c0_2d = c0[0].astype(jnp.float32)                      # (B, H)

    full = lambda shape: pl.BlockSpec(shape, lambda i: (0,) * len(shape))

    out_pad, h_n, c_n = pl.pallas_call(
        functools.partial(_lstm_kernel, seq_len=T, batch=B, hidden_size=H),
        out_shape=(
            jax.ShapeDtypeStruct((B, O_pad), jnp.float32),
            jax.ShapeDtypeStruct((B, H), jnp.float32),
            jax.ShapeDtypeStruct((B, H), jnp.float32),
        ),
        grid=(1,),
        in_specs=[
            full((T * B, H)),      # embedded tokens, time-major rows
            full((H, 4 * H)),      # W_ih^T (bf16)
            full((H, 4 * H)),      # W_hh^T (bf16)
            full((1, 4 * H)),      # b_ih + b_hh (f32)
            full((H, O_pad)),      # fc_w^T padded (bf16)
            full((1, O_pad)),      # fc_b padded (f32)
            full((B, H)),          # h0
            full((B, H)),          # c0
        ],
        out_specs=[full((B, O_pad)), full((B, H)), full((B, H))],
        compiler_params=pltpu.CompilerParams(
            dimension_semantics=("arbitrary",)),
    )(x2, wih_t, whh_t, bias, fcw_pad, fcb_pad, h0_2d, c0_2d)

    out = out_pad[:, :O]
    return out, (h_n[None, :, :], c_n[None, :, :])


def _reference_forward(tokens, hidden, params):
    """Pure-JAX f32 reference matching the PyTorch forward."""
    emb, w_ih, w_hh, b_ih, b_hh, fc_w, fc_b = (
        params["embedding"], params["w_ih"], params["w_hh"],
        params["b_ih"], params["b_hh"], params["fc_w"], params["fc_b"])
    h, c = hidden[0][0], hidden[1][0]
    H = emb.shape[1]
    x = jnp.take(emb, tokens, axis=0)                      # (B, T, H)
    for t in range(tokens.shape[1]):
        g = x[:, t, :] @ w_ih.T + b_ih + h @ w_hh.T + b_hh
        i_g = jax.nn.sigmoid(g[:, 0 * H:1 * H])
        f_g = jax.nn.sigmoid(g[:, 1 * H:2 * H])
        g_g = jnp.tanh(g[:, 2 * H:3 * H])
        o_g = jax.nn.sigmoid(g[:, 3 * H:4 * H])
        c = f_g * c + i_g * g_g
        h = o_g * jnp.tanh(c)
    logits = h @ fc_w.T + fc_b
    return jax.nn.log_softmax(logits, axis=1), (h[None], c[None])


def init_params(key, input_size, hidden_size, output_size):
    ks = jax.random.split(key, 7)
    s = 0.1
    return {
        "embedding": s * jax.random.normal(ks[0], (input_size, hidden_size), jnp.float32),
        "w_ih": s * jax.random.normal(ks[1], (4 * hidden_size, hidden_size), jnp.float32),
        "w_hh": s * jax.random.normal(ks[2], (4 * hidden_size, hidden_size), jnp.float32),
        "b_ih": s * jax.random.normal(ks[3], (4 * hidden_size,), jnp.float32),
        "b_hh": s * jax.random.normal(ks[4], (4 * hidden_size,), jnp.float32),
        "fc_w": s * jax.random.normal(ks[5], (output_size, hidden_size), jnp.float32),
        "fc_b": s * jax.random.normal(ks[6], (output_size,), jnp.float32),
    }


if __name__ == "__main__":
    input_size = 16    # vocab
    hidden_size = 32
    output_size = 10
    num_layers = 1
    B, T = 2, 8

    key = jax.random.PRNGKey(0)
    k_tok, k_par = jax.random.split(key)
    tokens = jax.random.randint(k_tok, (B, T), 0, input_size, dtype=jnp.int32)
    params = init_params(k_par, input_size, hidden_size, output_size)

    # initHidden-equivalent (zeros), broadcast to batch B
    h0 = jnp.zeros((num_layers, B, hidden_size), jnp.float32)
    c0 = jnp.zeros((num_layers, B, hidden_size), jnp.float32)

    out, (h_n, c_n) = simple_lstm_forward(tokens, (h0, c0), params)
    jax.block_until_ready((out, h_n, c_n))

    assert out.shape == (B, output_size)
    assert h_n.shape == (num_layers, B, hidden_size)
    assert c_n.shape == (num_layers, B, hidden_size)
    # log_softmax rows should sum (in prob space) to ~1
    assert jnp.allclose(jnp.sum(jnp.exp(out), axis=1), 1.0, atol=1e-5)

    # Numerical check vs pure-JAX f32 reference (kernel uses bf16 weights with
    # f32 accumulation, so allow a loose tolerance).
    ref_out, (ref_h, ref_c) = _reference_forward(tokens, (h0, c0), params)
    assert jnp.allclose(out, ref_out, atol=5e-2, rtol=5e-2)
    assert jnp.allclose(h_n, ref_h, atol=5e-2, rtol=5e-2)
    assert jnp.allclose(c_n, ref_c, atol=5e-2, rtol=5e-2)

    print("KERNEL_OK")
</pallas_src>

<mosaic_0001>
module attributes {stable_mosaic.version = 11 : i64} {
  func.func @_lstm_kernel(%arg0: i32, %arg1: memref<16x32xbf16, #tpu.memory_space<vmem>>, %arg2: memref<32x128xbf16, #tpu.memory_space<vmem>>, %arg3: memref<32x128xbf16, #tpu.memory_space<vmem>>, %arg4: memref<1x128xf32, #tpu.memory_space<vmem>>, %arg5: memref<32x128xbf16, #tpu.memory_space<vmem>>, %arg6: memref<1x128xf32, #tpu.memory_space<vmem>>, %arg7: memref<2x32xf32, #tpu.memory_space<vmem>>, %arg8: memref<2x32xf32, #tpu.memory_space<vmem>>, %arg9: memref<2x128xf32, #tpu.memory_space<vmem>>, %arg10: memref<2x32xf32, #tpu.memory_space<vmem>>, %arg11: memref<2x32xf32, #tpu.memory_space<vmem>>) attributes {dimension_semantics = [#tpu.dimension_semantics<arbitrary>], iteration_bounds = array<i64: 1>, scalar_prefetch = 0 : i64, scratch_operands = 0 : i64, tpu.core_type = #tpu.core_type<tc>, window_params = [{pipeline_mode = #tpu.pipeline_mode<synchronous>, transform_indices = @transform_0, window_bounds = array<i64: 16, 32>}, {pipeline_mode = #tpu.pipeline_mode<synchronous>, transform_indices = @transform_1, window_bounds = array<i64: 32, 128>}, {pipeline_mode = #tpu.pipeline_mode<synchronous>, transform_indices = @transform_2, window_bounds = array<i64: 32, 128>}, {pipeline_mode = #tpu.pipeline_mode<synchronous>, transform_indices = @transform_3, window_bounds = array<i64: 1, 128>}, {pipeline_mode = #tpu.pipeline_mode<synchronous>, transform_indices = @transform_4, window_bounds = array<i64: 32, 128>}, {pipeline_mode = #tpu.pipeline_mode<synchronous>, transform_indices = @transform_5, window_bounds = array<i64: 1, 128>}, {pipeline_mode = #tpu.pipeline_mode<synchronous>, transform_indices = @transform_6, window_bounds = array<i64: 2, 32>}, {pipeline_mode = #tpu.pipeline_mode<synchronous>, transform_indices = @transform_7, window_bounds = array<i64: 2, 32>}, {pipeline_mode = #tpu.pipeline_mode<synchronous>, transform_indices = @transform_8, window_bounds = array<i64: 2, 128>}, {pipeline_mode = #tpu.pipeline_mode<synchronous>, transform_indices = @transform_9, window_bounds = array<i64: 2, 32>}, {pipeline_mode = #tpu.pipeline_mode<synchronous>, transform_indices = @transform_10, window_bounds = array<i64: 2, 32>}]} {
    %c0 = arith.constant 0 : index
    %c0_0 = arith.constant 0 : index
    %0 = vector.load %arg2[%c0, %c0_0] : memref<32x128xbf16, #tpu.memory_space<vmem>>, vector<32x128xbf16>
    %c0_1 = arith.constant 0 : index
    %c0_2 = arith.constant 0 : index
    %1 = vector.load %arg3[%c0_1, %c0_2] : memref<32x128xbf16, #tpu.memory_space<vmem>>, vector<32x128xbf16>
    %c0_3 = arith.constant 0 : index
    %c0_4 = arith.constant 0 : index
    %2 = vector.load %arg1[%c0_3, %c0_4] : memref<16x32xbf16, #tpu.memory_space<vmem>>, vector<16x32xbf16>
    %cst = arith.constant dense<0.000000e+00> : vector<16x128xf32>
    %3 = tpu.matmul %2, %0, %cst {dimension_numbers = #tpu.dot_dimension_numbers<[1], [0], [0], [1], [0, 0, 1, 1], [], []>} : vector<16x32xbf16>, vector<32x128xbf16>, vector<16x128xf32> -> vector<16x128xf32>
    %c0_5 = arith.constant 0 : index
    %c0_6 = arith.constant 0 : index
    %4 = vector.load %arg4[%c0_5, %c0_6] : memref<1x128xf32, #tpu.memory_space<vmem>>, vector<1x128xf32>
    %5 = vector.broadcast %4 : vector<1x128xf32> to vector<16x128xf32>
    %6 = arith.addf %3, %5 : vector<16x128xf32>
    %c0_7 = arith.constant 0 : index
    %c0_8 = arith.constant 0 : index
    %7 = vector.load %arg7[%c0_7, %c0_8] : memref<2x32xf32, #tpu.memory_space<vmem>>, vector<2x32xf32>
    %c0_9 = arith.constant 0 : index
    %c0_10 = arith.constant 0 : index
    %8 = vector.load %arg8[%c0_9, %c0_10] : memref<2x32xf32, #tpu.memory_space<vmem>>, vector<2x32xf32>
    %9 = vector.extract_strided_slice %6 {offsets = [0, 0], sizes = [2, 128], strides = [1, 1]} : vector<16x128xf32> to vector<2x128xf32>
    %10 = arith.truncf %7 : vector<2x32xf32> to vector<2x32xbf16>
    %cst_11 = arith.constant dense<0.000000e+00> : vector<2x128xf32>
    %11 = tpu.matmul %10, %1, %cst_11 {dimension_numbers = #tpu.dot_dimension_numbers<[1], [0], [0], [1], [0, 0, 1, 1], [], []>} : vector<2x32xbf16>, vector<32x128xbf16>, vector<2x128xf32> -> vector<2x128xf32>
    %12 = arith.addf %9, %11 : vector<2x128xf32>
    %13 = vector.extract_strided_slice %12 {offsets = [0, 0], sizes = [2, 32], strides = [1, 1]} : vector<2x128xf32> to vector<2x32xf32>
    %14 = arith.negf %13 : vector<2x32xf32>
    %15 = math.exp %14 : vector<2x32xf32>
    %cst_12 = arith.constant 1.000000e+00 : f32
    %16 = vector.broadcast %cst_12 : f32 to vector<2x32xf32>
    %17 = arith.addf %16, %15 : vector<2x32xf32>
    %18 = arith.divf %16, %17 : vector<2x32xf32>
    %19 = vector.extract_strided_slice %12 {offsets = [0, 32], sizes = [2, 32], strides = [1, 1]} : vector<2x128xf32> to vector<2x32xf32>
    %20 = arith.negf %19 : vector<2x32xf32>
    %21 = math.exp %20 : vector<2x32xf32>
    %cst_13 = arith.constant 1.000000e+00 : f32
    %22 = vector.broadcast %cst_13 : f32 to vector<2x32xf32>
    %23 = arith.addf %22, %21 : vector<2x32xf32>
    %24 = arith.divf %22, %23 : vector<2x32xf32>
    %25 = vector.extract_strided_slice %12 {offsets = [0, 64], sizes = [2, 32], strides = [1, 1]} : vector<2x128xf32> to vector<2x32xf32>
    %26 = math.tanh %25 : vector<2x32xf32>
    %27 = vector.extract_strided_slice %12 {offsets = [0, 96], sizes = [2, 32], strides = [1, 1]} : vector<2x128xf32> to vector<2x32xf32>
    %28 = arith.negf %27 : vector<2x32xf32>
    %29 = math.exp %28 : vector<2x32xf32>
    %cst_14 = arith.constant 1.000000e+00 : f32
    %30 = vector.broadcast %cst_14 : f32 to vector<2x32xf32>
    %31 = arith.addf %30, %29 : vector<2x32xf32>
    %32 = arith.divf %30, %31 : vector<2x32xf32>
    %33 = arith.mulf %24, %8 : vector<2x32xf32>
    %34 = arith.mulf %18, %26 : vector<2x32xf32>
    %35 = arith.addf %33, %34 : vector<2x32xf32>
    %36 = math.tanh %35 : vector<2x32xf32>
    %37 = arith.mulf %32, %36 : vector<2x32xf32>
    %38 = vector.extract_strided_slice %6 {offsets = [2, 0], sizes = [2, 128], strides = [1, 1]} : vector<16x128xf32> to vector<2x128xf32>
    %39 = arith.truncf %37 : vector<2x32xf32> to vector<2x32xbf16>
    %cst_15 = arith.constant dense<0.000000e+00> : vector<2x128xf32>
    %40 = tpu.matmul %39, %1, %cst_15 {dimension_numbers = #tpu.dot_dimension_numbers<[1], [0], [0], [1], [0, 0, 1, 1], [], []>} : vector<2x32xbf16>, vector<32x128xbf16>, vector<2x128xf32> -> vector<2x128xf32>
    %41 = arith.addf %38, %40 : vector<2x128xf32>
    %42 = vector.extract_strided_slice %41 {offsets = [0, 0], sizes = [2, 32], strides = [1, 1]} : vector<2x128xf32> to vector<2x32xf32>
    %43 = arith.negf %42 : vector<2x32xf32>
    %44 = math.exp %43 : vector<2x32xf32>
    %cst_16 = arith.constant 1.000000e+00 : f32
    %45 = vector.broadcast %cst_16 : f32 to vector<2x32xf32>
    %46 = arith.addf %45, %44 : vector<2x32xf32>
    %47 = arith.divf %45, %46 : vector<2x32xf32>
    %48 = vector.extract_strided_slice %41 {offsets = [0, 32], sizes = [2, 32], strides = [1, 1]} : vector<2x128xf32> to vector<2x32xf32>
    %49 = arith.negf %48 : vector<2x32xf32>
    %50 = math.exp %49 : vector<2x32xf32>
    %cst_17 = arith.constant 1.000000e+00 : f32
    %51 = vector.broadcast %cst_17 : f32 to vector<2x32xf32>
    %52 = arith.addf %51, %50 : vector<2x32xf32>
    %53 = arith.divf %51, %52 : vector<2x32xf32>
    %54 = vector.extract_strided_slice %41 {offsets = [0, 64], sizes = [2, 32], strides = [1, 1]} : vector<2x128xf32> to vector<2x32xf32>
    %55 = math.tanh %54 : vector<2x32xf32>
    %56 = vector.extract_strided_slice %41 {offsets = [0, 96], sizes = [2, 32], strides = [1, 1]} : vector<2x128xf32> to vector<2x32xf32>
    %57 = arith.negf %56 : vector<2x32xf32>
    %58 = math.exp %57 : vector<2x32xf32>
    %cst_18 = arith.constant 1.000000e+00 : f32
    %59 = vector.broadcast %cst_18 : f32 to vector<2x32xf32>
    %60 = arith.addf %59, %58 : vector<2x32xf32>
    %61 = arith.divf %59, %60 : vector<2x32xf32>
    %62 = arith.mulf %53, %35 : vector<2x32xf32>
    %63 = arith.mulf %47, %55 : vector<2x32xf32>
    %64 = arith.addf %62, %63 : vector<2x32xf32>
    %65 = math.tanh %64 : vector<2x32xf32>
    %66 = arith.mulf %61, %65 : vector<2x32xf32>
    %67 = vector.extract_strided_slice %6 {offsets = [4, 0], sizes = [2, 128], strides = [1, 1]} : vector<16x128xf32> to vector<2x128xf32>
    %68 = arith.truncf %66 : vector<2x32xf32> to vector<2x32xbf16>
    %cst_19 = arith.constant dense<0.000000e+00> : vector<2x128xf32>
    %69 = tpu.matmul %68, %1, %cst_19 {dimension_numbers = #tpu.dot_dimension_numbers<[1], [0], [0], [1], [0, 0, 1, 1], [], []>} : vector<2x32xbf16>, vector<32x128xbf16>, vector<2x128xf32> -> vector<2x128xf32>
    %70 = arith.addf %67, %69 : vector<2x128xf32>
    %71 = vector.extract_strided_slice %70 {offsets = [0, 0], sizes = [2, 32], strides = [1, 1]} : vector<2x128xf32> to vector<2x32xf32>
    %72 = arith.negf %71 : vector<2x32xf32>
    %73 = math.exp %72 : vector<2x32xf32>
    %cst_20 = arith.constant 1.000000e+00 : f32
    %74 = vector.broadcast %cst_20 : f32 to vector<2x32xf32>
    %75 = arith.addf %74, %73 : vector<2x32xf32>
    %76 = arith.divf %74, %75 : vector<2x32xf32>
    %77 = vector.extract_strided_slice %70 {offsets = [0, 32], sizes = [2, 32], strides = [1, 1]} : vector<2x128xf32> to vector<2x32xf32>
    %78 = arith.negf %77 : vector<2x32xf32>
    %79 = math.exp %78 : vector<2x32xf32>
    %cst_21 = arith.constant 1.000000e+00 : f32
    %80 = vector.broadcast %cst_21 : f32 to vector<2x32xf32>
    %81 = arith.addf %80, %79 : vector<2x32xf32>
    %82 = arith.divf %80, %81 : vector<2x32xf32>
    %83 = vector.extract_strided_slice %70 {offsets = [0, 64], sizes = [2, 32], strides = [1, 1]} : vector<2x128xf32> to vector<2x32xf32>
    %84 = math.tanh %83 : vector<2x32xf32>
    %85 = vector.extract_strided_slice %70 {offsets = [0, 96], sizes = [2, 32], strides = [1, 1]} : vector<2x128xf32> to vector<2x32xf32>
    %86 = arith.negf %85 : vector<2x32xf32>
    %87 = math.exp %86 : vector<2x32xf32>
    %cst_22 = arith.constant 1.000000e+00 : f32
    %88 = vector.broadcast %cst_22 : f32 to vector<2x32xf32>
    %89 = arith.addf %88, %87 : vector<2x32xf32>
    %90 = arith.divf %88, %89 : vector<2x32xf32>
    %91 = arith.mulf %82, %64 : vector<2x32xf32>
    %92 = arith.mulf %76, %84 : vector<2x32xf32>
    %93 = arith.addf %91, %92 : vector<2x32xf32>
    %94 = math.tanh %93 : vector<2x32xf32>
    %95 = arith.mulf %90, %94 : vector<2x32xf32>
    %96 = vector.extract_strided_slice %6 {offsets = [6, 0], sizes = [2, 128], strides = [1, 1]} : vector<16x128xf32> to vector<2x128xf32>
    %97 = arith.truncf %95 : vector<2x32xf32> to vector<2x32xbf16>
    %cst_23 = arith.constant dense<0.000000e+00> : vector<2x128xf32>
    %98 = tpu.matmul %97, %1, %cst_23 {dimension_numbers = #tpu.dot_dimension_numbers<[1], [0], [0], [1], [0, 0, 1, 1], [], []>} : vector<2x32xbf16>, vector<32x128xbf16>, vector<2x128xf32> -> vector<2x128xf32>
    %99 = arith.addf %96, %98 : vector<2x128xf32>
    %100 = vector.extract_strided_slice %99 {offsets = [0, 0], sizes = [2, 32], strides = [1, 1]} : vector<2x128xf32> to vector<2x32xf32>
    %101 = arith.negf %100 : vector<2x32xf32>
    %102 = math.exp %101 : vector<2x32xf32>
    %cst_24 = arith.constant 1.000000e+00 : f32
    %103 = vector.broadcast %cst_24 : f32 to vector<2x32xf32>
    %104 = arith.addf %103, %102 : vector<2x32xf32>
    %105 = arith.divf %103, %104 : vector<2x32xf32>
    %106 = vector.extract_strided_slice %99 {offsets = [0, 32], sizes = [2, 32], strides = [1, 1]} : vector<2x128xf32> to vector<2x32xf32>
    %107 = arith.negf %106 : vector<2x32xf32>
    %108 = math.exp %107 : vector<2x32xf32>
    %cst_25 = arith.constant 1.000000e+00 : f32
    %109 = vector.broadcast %cst_25 : f32 to vector<2x32xf32>
    %110 = arith.addf %109, %108 : vector<2x32xf32>
    %111 = arith.divf %109, %110 : vector<2x32xf32>
    %112 = vector.extract_strided_slice %99 {offsets = [0, 64], sizes = [2, 32], strides = [1, 1]} : vector<2x128xf32> to vector<2x32xf32>
    %113 = math.tanh %112 : vector<2x32xf32>
    %114 = vector.extract_strided_slice %99 {offsets = [0, 96], sizes = [2, 32], strides = [1, 1]} : vector<2x128xf32> to vector<2x32xf32>
    %115 = arith.negf %114 : vector<2x32xf32>
    %116 = math.exp %115 : vector<2x32xf32>
    %cst_26 = arith.constant 1.000000e+00 : f32
    %117 = vector.broadcast %cst_26 : f32 to vector<2x32xf32>
    %118 = arith.addf %117, %116 : vector<2x32xf32>
    %119 = arith.divf %117, %118 : vector<2x32xf32>
    %120 = arith.mulf %111, %93 : vector<2x32xf32>
    %121 = arith.mulf %105, %113 : vector<2x32xf32>
    %122 = arith.addf %120, %121 : vector<2x32xf32>
    %123 = math.tanh %122 : vector<2x32xf32>
    %124 = arith.mulf %119, %123 : vector<2x32xf32>
    %125 = vector.extract_strided_slice %6 {offsets = [8, 0], sizes = [2, 128], strides = [1, 1]} : vector<16x128xf32> to vector<2x128xf32>
    %126 = arith.truncf %124 : vector<2x32xf32> to vector<2x32xbf16>
    %cst_27 = arith.constant dense<0.000000e+00> : vector<2x128xf32>
    %127 = tpu.matmul %126, %1, %cst_27 {dimension_numbers = #tpu.dot_dimension_numbers<[1], [0], [0], [1], [0, 0, 1, 1], [], []>} : vector<2x32xbf16>, vector<32x128xbf16>, vector<2x128xf32> -> vector<2x128xf32>
    %128 = arith.addf %125, %127 : vector<2x128xf32>
    %129 = vector.extract_strided_slice %128 {offsets = [0, 0], sizes = [2, 32], strides = [1, 1]} : vector<2x128xf32> to vector<2x32xf32>
    %130 = arith.negf %129 : vector<2x32xf32>
    %131 = math.exp %130 : vector<2x32xf32>
    %cst_28 = arith.constant 1.000000e+00 : f32
    %132 = vector.broadcast %cst_28 : f32 to vector<2x32xf32>
    %133 = arith.addf %132, %131 : vector<2x32xf32>
    %134 = arith.divf %132, %133 : vector<2x32xf32>
    %135 = vector.extract_strided_slice %128 {offsets = [0, 32], sizes = [2, 32], strides = [1, 1]} : vector<2x128xf32> to vector<2x32xf32>
    %136 = arith.negf %135 : vector<2x32xf32>
    %137 = math.exp %136 : vector<2x32xf32>
    %cst_29 = arith.constant 1.000000e+00 : f32
    %138 = vector.broadcast %cst_29 : f32 to vector<2x32xf32>
    %139 = arith.addf %138, %137 : vector<2x32xf32>
    %140 = arith.divf %138, %139 : vector<2x32xf32>
    %141 = vector.extract_strided_slice %128 {offsets = [0, 64], sizes = [2, 32], strides = [1, 1]} : vector<2x128xf32> to vector<2x32xf32>
    %142 = math.tanh %141 : vector<2x32xf32>
    %143 = vector.extract_strided_slice %128 {offsets = [0, 96], sizes = [2, 32], strides = [1, 1]} : vector<2x128xf32> to vector<2x32xf32>
    %144 = arith.negf %143 : vector<2x32xf32>
    %145 = math.exp %144 : vector<2x32xf32>
    %cst_30 = arith.constant 1.000000e+00 : f32
    %146 = vector.broadcast %cst_30 : f32 to vector<2x32xf32>
    %147 = arith.addf %146, %145 : vector<2x32xf32>
    %148 = arith.divf %146, %147 : vector<2x32xf32>
    %149 = arith.mulf %140, %122 : vector<2x32xf32>
    %150 = arith.mulf %134, %142 : vector<2x32xf32>
    %151 = arith.addf %149, %150 : vector<2x32xf32>
    %152 = math.tanh %151 : vector<2x32xf32>
    %153 = arith.mulf %148, %152 : vector<2x32xf32>
    %154 = vector.extract_strided_slice %6 {offsets = [10, 0], sizes = [2, 128], strides = [1, 1]} : vector<16x128xf32> to vector<2x128xf32>
    %155 = arith.truncf %153 : vector<2x32xf32> to vector<2x32xbf16>
    %cst_31 = arith.constant dense<0.000000e+00> : vector<2x128xf32>
    %156 = tpu.matmul %155, %1, %cst_31 {dimension_numbers = #tpu.dot_dimension_numbers<[1], [0], [0], [1], [0, 0, 1, 1], [], []>} : vector<2x32xbf16>, vector<32x128xbf16>, vector<2x128xf32> -> vector<2x128xf32>
    %157 = arith.addf %154, %156 : vector<2x128xf32>
    %158 = vector.extract_strided_slice %157 {offsets = [0, 0], sizes = [2, 32], strides = [1, 1]} : vector<2x128xf32> to vector<2x32xf32>
    %159 = arith.negf %158 : vector<2x32xf32>
    %160 = math.exp %159 : vector<2x32xf32>
    %cst_32 = arith.constant 1.000000e+00 : f32
    %161 = vector.broadcast %cst_32 : f32 to vector<2x32xf32>
    %162 = arith.addf %161, %160 : vector<2x32xf32>
    %163 = arith.divf %161, %162 : vector<2x32xf32>
    %164 = vector.extract_strided_slice %157 {offsets = [0, 32], sizes = [2, 32], strides = [1, 1]} : vector<2x128xf32> to vector<2x32xf32>
    %165 = arith.negf %164 : vector<2x32xf32>
    %166 = math.exp %165 : vector<2x32xf32>
    %cst_33 = arith.constant 1.000000e+00 : f32
    %167 = vector.broadcast %cst_33 : f32 to vector<2x32xf32>
    %168 = arith.addf %167, %166 : vector<2x32xf32>
    %169 = arith.divf %167, %168 : vector<2x32xf32>
    %170 = vector.extract_strided_slice %157 {offsets = [0, 64], sizes = [2, 32], strides = [1, 1]} : vector<2x128xf32> to vector<2x32xf32>
    %171 = math.tanh %170 : vector<2x32xf32>
    %172 = vector.extract_strided_slice %157 {offsets = [0, 96], sizes = [2, 32], strides = [1, 1]} : vector<2x128xf32> to vector<2x32xf32>
    %173 = arith.negf %172 : vector<2x32xf32>
    %174 = math.exp %173 : vector<2x32xf32>
    %cst_34 = arith.constant 1.000000e+00 : f32
    %175 = vector.broadcast %cst_34 : f32 to vector<2x32xf32>
    %176 = arith.addf %175, %174 : vector<2x32xf32>
    %177 = arith.divf %175, %176 : vector<2x32xf32>
    %178 = arith.mulf %169, %151 : vector<2x32xf32>
    %179 = arith.mulf %163, %171 : vector<2x32xf32>
    %180 = arith.addf %178, %179 : vector<2x32xf32>
    %181 = math.tanh %180 : vector<2x32xf32>
    %182 = arith.mulf %177, %181 : vector<2x32xf32>
    %183 = vector.extract_strided_slice %6 {offsets = [12, 0], sizes = [2, 128], strides = [1, 1]} : vector<16x128xf32> to vector<2x128xf32>
    %184 = arith.truncf %182 : vector<2x32xf32> to vector<2x32xbf16>
    %cst_35 = arith.constant dense<0.000000e+00> : vector<2x128xf32>
    %185 = tpu.matmul %184, %1, %cst_35 {dimension_numbers = #tpu.dot_dimension_numbers<[1], [0], [0], [1], [0, 0, 1, 1], [], []>} : vector<2x32xbf16>, vector<32x128xbf16>, vector<2x128xf32> -> vector<2x128xf32>
    %186 = arith.addf %183, %185 : vector<2x128xf32>
    %187 = vector.extract_strided_slice %186 {offsets = [0, 0], sizes = [2, 32], strides = [1, 1]} : vector<2x128xf32> to vector<2x32xf32>
    %188 = arith.negf %187 : vector<2x32xf32>
    %189 = math.exp %188 : vector<2x32xf32>
    %cst_36 = arith.constant 1.000000e+00 : f32
    %190 = vector.broadcast %cst_36 : f32 to vector<2x32xf32>
    %191 = arith.addf %190, %189 : vector<2x32xf32>
    %192 = arith.divf %190, %191 : vector<2x32xf32>
    %193 = vector.extract_strided_slice %186 {offsets = [0, 32], sizes = [2, 32], strides = [1, 1]} : vector<2x128xf32> to vector<2x32xf32>
    %194 = arith.negf %193 : vector<2x32xf32>
    %195 = math.exp %194 : vector<2x32xf32>
    %cst_37 = arith.constant 1.000000e+00 : f32
    %196 = vector.broadcast %cst_37 : f32 to vector<2x32xf32>
    %197 = arith.addf %196, %195 : vector<2x32xf32>
    %198 = arith.divf %196, %197 : vector<2x32xf32>
    %199 = vector.extract_strided_slice %186 {offsets = [0, 64], sizes = [2, 32], strides = [1, 1]} : vector<2x128xf32> to vector<2x32xf32>
    %200 = math.tanh %199 : vector<2x32xf32>
    %201 = vector.extract_strided_slice %186 {offsets = [0, 96], sizes = [2, 32], strides = [1, 1]} : vector<2x128xf32> to vector<2x32xf32>
    %202 = arith.negf %201 : vector<2x32xf32>
    %203 = math.exp %202 : vector<2x32xf32>
    %cst_38 = arith.constant 1.000000e+00 : f32
    %204 = vector.broadcast %cst_38 : f32 to vector<2x32xf32>
    %205 = arith.addf %204, %203 : vector<2x32xf32>
    %206 = arith.divf %204, %205 : vector<2x32xf32>
    %207 = arith.mulf %198, %180 : vector<2x32xf32>
    %208 = arith.mulf %192, %200 : vector<2x32xf32>
    %209 = arith.addf %207, %208 : vector<2x32xf32>
    %210 = math.tanh %209 : vector<2x32xf32>
    %211 = arith.mulf %206, %210 : vector<2x32xf32>
    %212 = vector.extract_strided_slice %6 {offsets = [14, 0], sizes = [2, 128], strides = [1, 1]} : vector<16x128xf32> to vector<2x128xf32>
    %213 = arith.truncf %211 : vector<2x32xf32> to vector<2x32xbf16>
    %cst_39 = arith.constant dense<0.000000e+00> : vector<2x128xf32>
    %214 = tpu.matmul %213, %1, %cst_39 {dimension_numbers = #tpu.dot_dimension_numbers<[1], [0], [0], [1], [0, 0, 1, 1], [], []>} : vector<2x32xbf16>, vector<32x128xbf16>, vector<2x128xf32> -> vector<2x128xf32>
    %215 = arith.addf %212, %214 : vector<2x128xf32>
    %216 = vector.extract_strided_slice %215 {offsets = [0, 0], sizes = [2, 32], strides = [1, 1]} : vector<2x128xf32> to vector<2x32xf32>
    %217 = arith.negf %216 : vector<2x32xf32>
    %218 = math.exp %217 : vector<2x32xf32>
    %cst_40 = arith.constant 1.000000e+00 : f32
    %219 = vector.broadcast %cst_40 : f32 to vector<2x32xf32>
    %220 = arith.addf %219, %218 : vector<2x32xf32>
    %221 = arith.divf %219, %220 : vector<2x32xf32>
    %222 = vector.extract_strided_slice %215 {offsets = [0, 32], sizes = [2, 32], strides = [1, 1]} : vector<2x128xf32> to vector<2x32xf32>
    %223 = arith.negf %222 : vector<2x32xf32>
    %224 = math.exp %223 : vector<2x32xf32>
    %cst_41 = arith.constant 1.000000e+00 : f32
    %225 = vector.broadcast %cst_41 : f32 to vector<2x32xf32>
    %226 = arith.addf %225, %224 : vector<2x32xf32>
    %227 = arith.divf %225, %226 : vector<2x32xf32>
    %228 = vector.extract_strided_slice %215 {offsets = [0, 64], sizes = [2, 32], strides = [1, 1]} : vector<2x128xf32> to vector<2x32xf32>
    %229 = math.tanh %228 : vector<2x32xf32>
    %230 = vector.extract_strided_slice %215 {offsets = [0, 96], sizes = [2, 32], strides = [1, 1]} : vector<2x128xf32> to vector<2x32xf32>
    %231 = arith.negf %230 : vector<2x32xf32>
    %232 = math.exp %231 : vector<2x32xf32>
    %cst_42 = arith.constant 1.000000e+00 : f32
    %233 = vector.broadcast %cst_42 : f32 to vector<2x32xf32>
    %234 = arith.addf %233, %232 : vector<2x32xf32>
    %235 = arith.divf %233, %234 : vector<2x32xf32>
    %236 = arith.mulf %227, %209 : vector<2x32xf32>
    %237 = arith.mulf %221, %229 : vector<2x32xf32>
    %238 = arith.addf %236, %237 : vector<2x32xf32>
    %239 = math.tanh %238 : vector<2x32xf32>
    %240 = arith.mulf %235, %239 : vector<2x32xf32>
    %241 = arith.truncf %240 : vector<2x32xf32> to vector<2x32xbf16>
    %c0_43 = arith.constant 0 : index
    %c0_44 = arith.constant 0 : index
    %242 = vector.load %arg5[%c0_43, %c0_44] : memref<32x128xbf16, #tpu.memory_space<vmem>>, vector<32x128xbf16>
    %cst_45 = arith.constant dense<0.000000e+00> : vector<2x128xf32>
    %243 = tpu.matmul %241, %242, %cst_45 {dimension_numbers = #tpu.dot_dimension_numbers<[1], [0], [0], [1], [0, 0, 1, 1], [], []>} : vector<2x32xbf16>, vector<32x128xbf16>, vector<2x128xf32> -> vector<2x128xf32>
    %c0_46 = arith.constant 0 : index
    %c0_47 = arith.constant 0 : index
    %244 = vector.load %arg6[%c0_46, %c0_47] : memref<1x128xf32, #tpu.memory_space<vmem>>, vector<1x128xf32>
    %245 = vector.broadcast %244 : vector<1x128xf32> to vector<2x128xf32>
    %246 = arith.addf %243, %245 : vector<2x128xf32>
    %cst_48 = arith.constant dense<0xFF800000> : vector<2xf32>
    %247 = vector.multi_reduction <maximumf>, %246, %cst_48 [1] : vector<2x128xf32> to vector<2xf32>
    %248 = vector.shape_cast %247 : vector<2xf32> to vector<2x1xf32>
    %249 = vector.broadcast %248 : vector<2x1xf32> to vector<2x128xf32>
    %250 = arith.subf %246, %249 : vector<2x128xf32>
    %251 = math.exp %250 : vector<2x128xf32>
    %cst_49 = arith.constant dense<0.000000e+00> : vector<2xf32>
    %252 = vector.multi_reduction <add>, %251, %cst_49 [1] : vector<2x128xf32> to vector<2xf32>
    %253 = vector.shape_cast %252 : vector<2xf32> to vector<2x1xf32>
    %254 = math.log %253 : vector<2x1xf32>
    %255 = vector.broadcast %254 : vector<2x1xf32> to vector<2x128xf32>
    %256 = arith.subf %250, %255 : vector<2x128xf32>
    %c0_50 = arith.constant 0 : index
    %c0_51 = arith.constant 0 : index
    %257 = vector.load %arg9[%c0_50, %c0_51] : memref<2x128xf32, #tpu.memory_space<vmem>>, vector<2x128xf32>
    tpu.vector_store %arg9[%c0_50, %c0_51], %256 {strides = array<i32>} : memref<2x128xf32, #tpu.memory_space<vmem>>, vector<2x128xf32>,
    %c0_52 = arith.constant 0 : index
    %c0_53 = arith.constant 0 : index
    %258 = vector.load %arg10[%c0_52, %c0_53] : memref<2x32xf32, #tpu.memory_space<vmem>>, vector<2x32xf32>
    tpu.vector_store %arg10[%c0_52, %c0_53], %240 {strides = array<i32>} : memref<2x32xf32, #tpu.memory_space<vmem>>, vector<2x32xf32>,
    %c0_54 = arith.constant 0 : index
    %c0_55 = arith.constant 0 : index
    %259 = vector.load %arg11[%c0_54, %c0_55] : memref<2x32xf32, #tpu.memory_space<vmem>>, vector<2x32xf32>
    tpu.vector_store %arg11[%c0_54, %c0_55], %238 {strides = array<i32>} : memref<2x32xf32, #tpu.memory_space<vmem>>, vector<2x32xf32>,
    return
  }
  func.func @transform_0(%arg0: i32) -> (i32, i32) {
    %c0_i32 = arith.constant 0 : i32
    %c0_i32_0 = arith.constant 0 : i32
    %c0_i32_1 = arith.constant 0 : i32
    return %c0_i32, %c0_i32_0 : i32, i32
  }
  func.func @transform_1(%arg0: i32) -> (i32, i32) {
    %c0_i32 = arith.constant 0 : i32
    %c0_i32_0 = arith.constant 0 : i32
    %c0_i32_1 = arith.constant 0 : i32
    return %c0_i32, %c0_i32_0 : i32, i32
  }
  func.func @transform_2(%arg0: i32) -> (i32, i32) {
    %c0_i32 = arith.constant 0 : i32
    %c0_i32_0 = arith.constant 0 : i32
    %c0_i32_1 = arith.constant 0 : i32
    return %c0_i32, %c0_i32_0 : i32, i32
  }
  func.func @transform_3(%arg0: i32) -> (i32, i32) {
    %c0_i32 = arith.constant 0 : i32
    %c0_i32_0 = arith.constant 0 : i32
    %c0_i32_1 = arith.constant 0 : i32
    return %c0_i32, %c0_i32_0 : i32, i32
  }
  func.func @transform_4(%arg0: i32) -> (i32, i32) {
    %c0_i32 = arith.constant 0 : i32
    %c0_i32_0 = arith.constant 0 : i32
    %c0_i32_1 = arith.constant 0 : i32
    return %c0_i32, %c0_i32_0 : i32, i32
  }
  func.func @transform_5(%arg0: i32) -> (i32, i32) {
    %c0_i32 = arith.constant 0 : i32
    %c0_i32_0 = arith.constant 0 : i32
    %c0_i32_1 = arith.constant 0 : i32
    return %c0_i32, %c0_i32_0 : i32, i32
  }
  func.func @transform_6(%arg0: i32) -> (i32, i32) {
    %c0_i32 = arith.constant 0 : i32
    %c0_i32_0 = arith.constant 0 : i32
    %c0_i32_1 = arith.constant 0 : i32
    return %c0_i32, %c0_i32_0 : i32, i32
  }
  func.func @transform_7(%arg0: i32) -> (i32, i32) {
    %c0_i32 = arith.constant 0 : i32
    %c0_i32_0 = arith.constant 0 : i32
    %c0_i32_1 = arith.constant 0 : i32
    return %c0_i32, %c0_i32_0 : i32, i32
  }
  func.func @transform_8(%arg0: i32) -> (i32, i32) {
    %c0_i32 = arith.constant 0 : i32
    %c0_i32_0 = arith.constant 0 : i32
    %c0_i32_1 = arith.constant 0 : i32
    return %c0_i32, %c0_i32_0 : i32, i32
  }
  func.func @transform_9(%arg0: i32) -> (i32, i32) {
    %c0_i32 = arith.constant 0 : i32
    %c0_i32_0 = arith.constant 0 : i32
    %c0_i32_1 = arith.constant 0 : i32
    return %c0_i32, %c0_i32_0 : i32, i32
  }
  func.func @transform_10(%arg0: i32) -> (i32, i32) {
    %c0_i32 = arith.constant 0 : i32
    %c0_i32_0 = arith.constant 0 : i32
    %c0_i32_1 = arith.constant 0 : i32
    return %c0_i32, %c0_i32_0 : i32, i32
  }
}

</mosaic_0001>

<bundles_post_ra>
// kernel: tpu_custom_call.1
= control target key start
LH: loop header
LB: loop body
LE: loop exit
PB: predicated region body
PF: predicated region fallthrough
CT: control target
= control target key end

     0   :  { %16 = vsyncpa [#allocation3], 0  ;;  %s1643_s0 = inlined_call_operand.hbm [shape: bf16[16,32], index: 0, kind: input, shape index: {}]   ;;  %s1644_s1 = inlined_call_operand.hbm [shape: bf16[32,128], index: 1, kind: input, shape index: {}]   ;;  %s1645_s2 = inlined_call_operand.hbm [shape: bf16[32,128], index: 2, kind: input, shape index: {}]   ;;  %s1646_s3 = inlined_call_operand.vmem [shape: f32[1,128], index: 3, kind: input, shape index: {}]   ;;  %s1647_s4 = inlined_call_operand.hbm [shape: bf16[32,128], index: 4, kind: input, shape index: {}]   ;;  %s1648_s5 = inlined_call_operand.vmem [shape: f32[1,128], index: 5, kind: input, shape index: {}]   ;;  %s1649_s6 = inlined_call_operand.vmem [shape: f32[2,32], index: 6, kind: input, shape index: {}]   ;;  %s1650_s7 = inlined_call_operand.vmem [shape: f32[2,32], index: 7, kind: input, shape index: {}]   ;;  %s1651_s8 = inlined_call_operand.hbm [shape: f32[2,128], index: 8, kind: output, shape index: {0}]   ;;  %s1652_s9 = inlined_call_operand.hbm [shape: f32[2,32], index: 9, kind: output, shape index: {1}]   ;;  %s1653_s10 = inlined_call_operand.hbm [shape: f32[2,32], index: 10, kind: output, shape index: {2}]  }
   0x1   :  { %17 = vsyncpa [#allocation6], 0 }
   0x2   :  { %18 = vsyncpa [#allocation9], 0 }
   0x3   :  { %19 = vsyncpa [#allocation4], 0 }
   0x4   :  { %20 = vsyncpa [#allocation12], 0  ;;  %s1333_s13 = smov [#allocation5]   ;;  %s1334_s15 = smov [#allocation2]  }
   0x5   :  { %s38_s14 = sshll.u32 %s1333_s13, 4  ;;  %s26_s16 = sshll.u32 %s1334_s15, 4  ;;  %s39_s14 = int_to_ptr.vmem [resolvable:$true] %s38_s14  ;;  %s1401_s16 = int_to_ptr.vmem [resolvable:$true] %s26_s16 }
   0x6   :  { %s1169_s19 = scalar_lea.hbm %s1644_s1, 256 }
   0x7   :  { %p1170_p0 = scmp.ne.s32.totalorder %s1644_s1, %s1169_s19  ;;  %p1173_p1 = scmp.lt.u32.totalorder %s1169_s19, %s1644_s1 }
   0x9   :  { %p1175_p2 = pnand %p1173_p1, %p1170_p0 }
   0xb   :  { %1178 = shalt.err (!%p1175_p2)
}
   0xc   :  { %s1179_s24 = scalar_lea.vmem %s39_s14, 256  ;;  %p1184_p4 = scmp.lt.s32.totalorder %s39_s14, %s39_s14 }
   0xd   :  { %p1180_p3 = scmp.ne.s32.totalorder %s39_s14, %s1179_s24  ;;  %p1185_p5 = scmp.lt.s32.totalorder %s1179_s24, %s1179_s24 }
   0xf   :  { %p1186_p6 = por %p1185_p5, %p1184_p4 }
  0x11   :  { %p1187_p7 = pnand %p1186_p6, %p1180_p3 }
  0x13   :  { %1190 = shalt.err (!%p1187_p7)
}
  0x14   :  { %s1335_s25 = smov 64   ;;  %s1336_s26 = smov 4  }
  0x15   :  { %44 = dma.hbm_to_vmem [thread:$0]  %s1644_s1, 256, %s39_s14, [#allocation6], %s1335_s25, %s1335_s25, %s1336_s26  }
  0x16   :  { %s1191_s11 = scalar_lea.hbm %s1643_s0, 128 }
  0x17   :  { %p1192_p8 = scmp.ne.s32.totalorder %s1643_s0, %s1191_s11  ;;  %p1195_p9 = scmp.lt.u32.totalorder %s1191_s11, %s1643_s0 }
  0x19   :  { %p1197_p10 = pnand %p1195_p9, %p1192_p8 }
  0x1b   :  { %1200 = shalt.err (!%p1197_p10)
}
  0x1c   :  { %s1201_s18 = scalar_lea.vmem %s1401_s16, 128  ;;  %p1206_p12 = scmp.lt.s32.totalorder %s1401_s16, %s1401_s16 }
  0x1d   :  { %p1202_p11 = scmp.ne.s32.totalorder %s1401_s16, %s1201_s18  ;;  %p1207_p13 = scmp.lt.s32.totalorder %s1201_s18, %s1201_s18 }
  0x1f   :  { %p1208_p0 = por %p1207_p13, %p1206_p12 }
  0x21   :  { %p1209_p1 = pnand %p1208_p0, %p1202_p11 }
  0x23   :  { %1212 = shalt.err (!%p1209_p1)
}
  0x24   :  { %32 = dma.hbm_to_vmem [thread:$0]  %s1643_s0, 128, %s1401_s16, [#allocation3], %s1335_s25, %s1335_s25, %s1336_s26  }
  0x25   :  { %s1337_s19 = smov [#allocation7]   ;;  %s1338_s21 = smov [#allocation8]  }
  0x26   :  { %s50_s20 = sshll.u32 %s1337_s19, 4  ;;  %s64_s22 = sshll.u32 %s1338_s21, 4  ;;  %s51_s20 = int_to_ptr.vmem [resolvable:$true] %s50_s20  ;;  %s1438_s22 = int_to_ptr.vmem [resolvable:$true] %s64_s22 }
  0x27   :  { %s1213_s27 = scalar_lea.hbm %s1645_s2, 256 }
  0x28   :  { %p1214_p2 = scmp.ne.s32.totalorder %s1645_s2, %s1213_s27  ;;  %p1217_p3 = scmp.lt.u32.totalorder %s1213_s27, %s1645_s2 }
  0x2a   :  { %p1219_p4 = pnand %p1217_p3, %p1214_p2 }
  0x2c   :  { %1222 = shalt.err (!%p1219_p4)
}
  0x2d   :  { %s1223_s0 = scalar_lea.vmem %s51_s20, 256  ;;  %p1228_p6 = scmp.lt.s32.totalorder %s51_s20, %s51_s20 }
  0x2e   :  { %p1224_p5 = scmp.ne.s32.totalorder %s51_s20, %s1223_s0  ;;  %p1229_p7 = scmp.lt.s32.totalorder %s1223_s0, %s1223_s0 }
  0x30   :  { %p1230_p8 = por %p1229_p7, %p1228_p6 }
  0x32   :  { %p1231_p9 = pnand %p1230_p8, %p1224_p5 }
  0x34   :  { %1234 = shalt.err (!%p1231_p9)
}
  0x35   :  { %56 = dma.hbm_to_vmem [thread:$0]  %s1645_s2, 256, %s51_s20, [#allocation6], %s1335_s25, %s1335_s25, %s1336_s26  }
  0x36   :  { %s1235_s17 = scalar_lea.hbm %s1647_s4, 256 }
  0x37   :  { %p1236_p10 = scmp.ne.s32.totalorder %s1647_s4, %s1235_s17  ;;  %p1239_p11 = scmp.lt.u32.totalorder %s1235_s17, %s1647_s4 }
  0x39   :  { %p1241_p12 = pnand %p1239_p11, %p1236_p10 }
  0x3b   :  { %1244 = shalt.err (!%p1241_p12)
}
  0x3c   :  { %s1245_s21 = scalar_lea.vmem %s1438_s22, 256  ;;  %p1250_p0 = scmp.lt.s32.totalorder %s1438_s22, %s1438_s22 }
  0x3d   :  { %p1246_p13 = scmp.ne.s32.totalorder %s1438_s22, %s1245_s21  ;;  %p1251_p1 = scmp.lt.s32.totalorder %s1245_s21, %s1245_s21 }
  0x3f   :  { %p1252_p2 = por %p1251_p1, %p1250_p0 }
  0x41   :  { %p1253_p3 = pnand %p1252_p2, %p1246_p13 }
  0x43   :  { %1256 = shalt.err (!%p1253_p3)
}
  0x44   :  { %70 = dma.hbm_to_vmem [thread:$0]  %s1647_s4, 256, %s1438_s22, [#allocation9], %s1335_s25, %s1335_s25, %s1336_s26  }
  0x45   :  { %1323 = dma.done.wait [#allocation3], 128  }
  0x46   :  { %1324 = vsyncadd [#allocation3], 4294967168 }
  0x47   :  { %1325 = dma.done.wait [#allocation6], 512  }
  0x48   :  { %1326 = vsyncadd [#allocation6], 4294966784 }
  0x49   :  { %1327 = dma.done.wait [#allocation9], 256  }
  0x4a   :  { %1328 = vsyncadd [#allocation9], 4294967040  ;;  %v1339_v0 = vmov 0.0   ;;  %vm1340_vm0 = vmmov 0   ;;  %v1094_v1 = vld [vmem:[#allocation5] sm:$0xff]   ;;  %v1481_v2 = vld [vmem:[#allocation7] sm:$0xff]  }
  0x4b   :  { %1001 = vmatprep.subr.bf16.mxu0 %v1339_v0  ;;  %1009 = vmatprep.subr.bf16.mxu1 %v1339_v0  ;;  %v1096_v3 = vld [vmem:[#allocation5 + $0x8] sm:$0xff]   ;;  %v1485_v4 = vld [vmem:[#allocation7 + $0x8] sm:$0xff]   ;;  %vm124_vm1 = vcmask 261120   ;;  %s1341_s24 = smov 32   ;;  %vm875_vm2 = vcmask 1041408   ;;  %vm893_vm3 = vcmask 261126  }
  0x4c   :  { %1005 = vmatprep.mubr.msk.bf16.mxu0 %vm1340_vm0, %v1339_v0  ;;  %1013 = vmatprep.mubr.msk.bf16.mxu1 %vm1340_vm0, %v1339_v0  ;;  %v1098_v5 = vld [vmem:[#allocation2] sm:$0xff]   ;;  %s1344_s29 = smov [#allocation13]  }
  0x4d   :  { %1002 = vmatpush3.bf16.msra.mxu0 %v1094_v1  ;;  %1010 = vmatpush3.bf16.msra.mxu1 %v1481_v2  ;;  %v169_v6 = vld [vmem:[%s1649_s6] sm:$0x3]  ;;  %s926_s30 = sshll.u32 %s1344_s29, 4  ;;  %s927_s30 = int_to_ptr.vmem [resolvable:$true] %s926_s30 }
  0x4e   :  { %1003 = vmatprep.subr.bf16.mxu0 %v1339_v0  ;;  %1011 = vmatprep.subr.bf16.mxu1 %v1339_v0  ;;  %v171_v7 = vpack.c.bf16 %v169_v6, %v169_v6  ;;  %v944_v8 = vld [vmem:[%s1646_s3] ss:$0 sm:$0xff] }
  0x4f   :  { %v170_v21 = vld [vmem:[%s1650_s7] sm:$0x3] }
  0x51   :  { %1004 = vmatpush3.bf16.msra.mxu0 %v1096_v3  ;;  %1012 = vmatpush3.bf16.msra.mxu1 %v1485_v4 }
  0x52   :  { %1017 = vmatprep.subr.bf16.mxu0 %v1339_v0  ;;  %1025 = vmatprep.subr.bf16.mxu1 %v1339_v0 }
  0x54   :  { %1006 = vmatmul.mubr.msk.bf16.vlgmr.msra.gmra.mrb[0].mxu0 %vm124_vm1, %v1098_v5  ;;  %1014 = vmatmul.mubr.msk.bf16.vlgmr.msra.gmra.mrb[0].mxu1 %vm124_vm1, %v171_v7 }
  0x55   :  { %1018 = vmatpush3.bf16.msra.mxu0 %v1481_v2  ;;  %1021 = vmatprep.mubr.msk.bf16.mxu0 %vm1340_vm0, %v1339_v0 }
  0x56   :  { %1019 = vmatprep.subr.bf16.mxu0 %v1339_v0  ;;  %1026 = vmatpush3.bf16.msra.mxu1 %v1481_v2 }
  0x57   :  { %1029 = vmatprep.mubr.msk.bf16.mxu1 %vm1340_vm0, %v1339_v0  ;;  %1027 = vmatprep.subr.bf16.mxu1 %v1339_v0 }
  0x59   :  { %1020 = vmatpush3.bf16.msra.mxu0 %v1485_v4 }
  0x5a   :  { %1033 = vmatprep.subr.bf16.mxu0 %v1339_v0  ;;  %1028 = vmatpush3.bf16.msra.mxu1 %v1485_v4 }
  0x5b   :  { %1041 = vmatprep.subr.bf16.mxu1 %v1339_v0 }
 0x127   :  { %v162_v9 = vpop.f32.mrb[0].mxu0  ;;  %v221_v11 = vpop.f32.mrb[0].mxu1 }
 0x128   :  { %v1511_v10 = vadd.f32 %v944_v8, %v162_v9  ;;  %v1007_v12 = vpop.f32.mrb[1].mxu0  ;;  %v1015_v13 = vpop.f32.mrb[1].mxu1 }
 0x129   :  { %v165_v14 = vpop.f32.mrb[2].mxu0  ;;  %v224_v17 = vpop.f32.mrb[2].mxu1 }
 0x12a   :  { %v227_v15 = vadd.f32 %v221_v11, %v1511_v10  ;;  %v1514_v16 = vadd.f32 %v944_v8, %v165_v14  ;;  %v1008_v18 = vpop.f32.mrb[3].mxu0  ;;  %v1016_v19 = vpop.f32.mrb[3].mxu1 }
 0x12c   :  { %1101 = vtanh.f32 %v227_v15  ;;  %v952_v22 = vmul.f32 -1.442695, %v227_v15 }
 0x12e   :  { %1103 = vpow2.f32 %v952_v22 }
 0x136   :  { %v1102_v20 = vpop.eup %1101 }
 0x137   :  { %241 = vrot.lane.b32.xlu0 %v1102_v20, %s1335_s25 }
 0x138   :  { %v1104_v23 = vpop.eup %1103 }
 0x139   :  { %v231_v24 = vadd.f32 1.0, %v1104_v23 }
 0x13b   :  { %236 = vrot.lane.b32.xlu0 %v170_v21, %s1341_s24  ;;  %1105 = vrcp.f32 %v231_v24 }
 0x145   :  { %v1106_v25 = vpop.eup %1105 }
 0x1a9   :  { %v242_v26 = vpop.permute.xlu0 %241 }
 0x1aa   :  { %v244_v27 = vmul.f32 %v1106_v25, %v242_v26 }
 0x1ac   :  { %246 = vrot.lane.b32.xlu1 %v244_v27, %s1341_s24 }
 0x1ad   :  { %v237_v28 = vpop.permute.xlu0 %236 }
 0x1ae   :  { %v239_v29 = vmul.f32 %v1106_v25, %v237_v28 }
 0x21e   :  { %v247_v30 = vpop.permute.xlu1 %246 }
 0x21f   :  { %v249_v31 = vadd.f32 %v247_v30, %v239_v29 }
 0x221   :  { %1107 = vtanh.f32 %v249_v31  ;;  %v315_v50 = vrot.slane %v249_v31, 6 }
 0x22b   :  { %v1108_v32 = vpop.eup %1107 }
 0x22c   :  { %252 = vrot.lane.b32.xlu1 %v1108_v32, %s1335_s25 }
 0x29e   :  { %v253_v33 = vpop.permute.xlu1 %252 }
 0x29f   :  { %v255_v34 = vmul.f32 %v1106_v25, %v253_v33 }
 0x2a1   :  { %v256_v35 = vpack.c.bf16 %v255_v34, %v255_v34 }
 0x2a3   :  { %258 = vrot.lane.b32.xlu0 %v256_v35, %s1341_s24 }
 0x315   :  { %v259_v36 = vpop.permute.xlu0 %258 }
 0x316   :  { %1022 = vmatmul.mubr.msk.bf16.vlgmr.msra.gmra.mrb[4].mxu0 %vm124_vm1, %v259_v36 }
 0x317   :  { %1034 = vmatpush3.bf16.msra.mxu0 %v1481_v2  ;;  %1037 = vmatprep.mubr.msk.bf16.mxu0 %vm1340_vm0, %v1339_v0 }
 0x318   :  { %1035 = vmatprep.subr.bf16.mxu0 %v1339_v0 }
 0x31b   :  { %1036 = vmatpush3.bf16.msra.mxu0 %v1485_v4 }
 0x31c   :  { %1049 = vmatprep.subr.bf16.mxu0 %v1339_v0 }
 0x3e9   :  { %v297_v37 = vpop.f32.mrb[4].mxu0 }
 0x3ea   :  { %v304_v38 = vrot.slane %v297_v37, 6  ;;  %v1023_v39 = vpop.f32.mrb[5].mxu0 }
 0x3eb   :  { %v300_v40 = vpop.f32.mrb[6].mxu0 }
 0x3ec   :  { %v306_v41 = vadd.f32 %v304_v38, %v1511_v10  ;;  %v1024_v42 = vpop.f32.mrb[7].mxu0 }
 0x3ee   :  { %1109 = vtanh.f32 %v306_v41  ;;  %v954_v44 = vmul.f32 -1.442695, %v306_v41 }
 0x3f0   :  { %1111 = vpow2.f32 %v954_v44 }
 0x3f8   :  { %v1110_v43 = vpop.eup %1109 }
 0x3f9   :  { %319 = vrot.lane.b32.xlu1 %v1110_v43, %s1335_s25 }
 0x3fa   :  { %v1112_v45 = vpop.eup %1111 }
 0x3fb   :  { %v310_v46 = vadd.f32 1.0, %v1112_v45 }
 0x3fd   :  { %1113 = vrcp.f32 %v310_v46 }
 0x407   :  { %v1114_v47 = vpop.eup %1113 }
 0x408   :  { %v317_v51 = vmul.f32 %v1114_v47, %v315_v50 }
 0x46b   :  { %v320_v48 = vpop.permute.xlu1 %319 }
 0x46c   :  { %v322_v49 = vmul.f32 %v1114_v47, %v320_v48 }
 0x46e   :  { %324 = vrot.lane.b32.xlu0 %v322_v49, %s1341_s24 }
 0x4e0   :  { %v325_v52 = vpop.permute.xlu0 %324 }
 0x4e1   :  { %v327_v53 = vadd.f32 %v325_v52, %v317_v51 }
 0x4e3   :  { %1115 = vtanh.f32 %v327_v53  ;;  %v394_v13 = vrot.slane %v327_v53, 6 }
 0x4ed   :  { %v1116_v54 = vpop.eup %1115 }
 0x4ee   :  { %330 = vrot.lane.b32.xlu1 %v1116_v54, %s1335_s25 }
 0x560   :  { %v331_v55 = vpop.permute.xlu1 %330 }
 0x561   :  { %v333_v56 = vmul.f32 %v1114_v47, %v331_v55 }
 0x563   :  { %v334_v57 = vpack.c.bf16 %v333_v56, %v333_v56 }
 0x565   :  { %v336_v58 = vrot.slane %v334_v57, 1 }
 0x567   :  { %337 = vrot.lane.b32.xlu0 %v336_v58, %s1341_s24 }
 0x5d9   :  { %v338_v59 = vpop.permute.xlu0 %337 }
 0x5da   :  { %1030 = vmatmul.mubr.msk.bf16.vlgmr.msra.gmra.mrb[4].mxu1 %vm124_vm1, %v338_v59 }
 0x5db   :  { %1042 = vmatpush3.bf16.msra.mxu1 %v1481_v2  ;;  %1045 = vmatprep.mubr.msk.bf16.mxu1 %vm1340_vm0, %v1339_v0 }
 0x5dc   :  { %1043 = vmatprep.subr.bf16.mxu1 %v1339_v0 }
 0x5df   :  { %1044 = vmatpush3.bf16.msra.mxu1 %v1485_v4 }
 0x5e0   :  { %1057 = vmatprep.subr.bf16.mxu1 %v1339_v0 }
 0x6ad   :  { %v376_v60 = vpop.f32.mrb[4].mxu1 }
 0x6ae   :  { %v383_v61 = vrot.slane %v376_v60, 4  ;;  %v1031_v62 = vpop.f32.mrb[5].mxu1 }
 0x6af   :  { %v379_v63 = vpop.f32.mrb[6].mxu1 }
 0x6b0   :  { %v385_v1 = vadd.f32 %v383_v61, %v1511_v10  ;;  %v1032_v3 = vpop.f32.mrb[7].mxu1 }
 0x6b2   :  { %1117 = vtanh.f32 %v385_v1  ;;  %v956_v6 = vmul.f32 -1.442695, %v385_v1 }
 0x6b4   :  { %1119 = vpow2.f32 %v956_v6 }
 0x6bc   :  { %v1118_v5 = vpop.eup %1117 }
 0x6bd   :  { %398 = vrot.lane.b32.xlu1 %v1118_v5, %s1335_s25 }
 0x6be   :  { %v1120_v7 = vpop.eup %1119 }
 0x6bf   :  { %v389_v8 = vadd.f32 1.0, %v1120_v7 }
 0x6c1   :  { %1121 = vrcp.f32 %v389_v8 }
 0x6cb   :  { %v1122_v9 = vpop.eup %1121 }
 0x6cc   :  { %v396_v14 = vmul.f32 %v1122_v9, %v394_v13 }
 0x72f   :  { %v399_v11 = vpop.permute.xlu1 %398 }
 0x730   :  { %v401_v12 = vmul.f32 %v1122_v9, %v399_v11 }
 0x732   :  { %403 = vrot.lane.b32.xlu0 %v401_v12, %s1341_s24 }
 0x7a4   :  { %v404_v15 = vpop.permute.xlu0 %403 }
 0x7a5   :  { %v406_v17 = vadd.f32 %v404_v15, %v396_v14 }
 0x7a7   :  { %1123 = vtanh.f32 %v406_v17  ;;  %v473_v37 = vrot.slane %v406_v17, 6 }
 0x7b1   :  { %v1124_v18 = vpop.eup %1123 }
 0x7b2   :  { %409 = vrot.lane.b32.xlu1 %v1124_v18, %s1335_s25 }
 0x824   :  { %v410_v19 = vpop.permute.xlu1 %409 }
 0x825   :  { %v412_v20 = vmul.f32 %v1122_v9, %v410_v19 }
 0x827   :  { %v413_v21 = vpack.c.bf16 %v412_v20, %v412_v20 }
 0x829   :  { %v415_v22 = vrot.slane %v413_v21, 2 }
 0x82b   :  { %416 = vrot.lane.b32.xlu0 %v415_v22, %s1341_s24 }
 0x89d   :  { %v417_v23 = vpop.permute.xlu0 %416 }
 0x89e   :  { %1038 = vmatmul.mubr.msk.bf16.vlgmr.msra.gmra.mrb[8].mxu0 %vm124_vm1, %v417_v23 }
 0x89f   :  { %1050 = vmatpush3.bf16.msra.mxu0 %v1481_v2  ;;  %1053 = vmatprep.mubr.msk.bf16.mxu0 %vm1340_vm0, %v1339_v0 }
 0x8a0   :  { %1051 = vmatprep.subr.bf16.mxu0 %v1339_v0 }
 0x8a3   :  { %1052 = vmatpush3.bf16.msra.mxu0 %v1485_v4 }
 0x8a4   :  { %1065 = vmatprep.subr.bf16.mxu0 %v1339_v0 }
 0x971   :  { %v455_v24 = vpop.f32.mrb[8].mxu0 }
 0x972   :  { %v462_v25 = vrot.slane %v455_v24, 2  ;;  %v1039_v26 = vpop.f32.mrb[9].mxu0 }
 0x973   :  { %v458_v27 = vpop.f32.mrb[10].mxu0 }
 0x974   :  { %v464_v28 = vadd.f32 %v462_v25, %v1511_v10  ;;  %v1040_v29 = vpop.f32.mrb[11].mxu0 }
 0x976   :  { %1125 = vtanh.f32 %v464_v28  ;;  %v958_v31 = vmul.f32 -1.442695, %v464_v28 }
 0x978   :  { %1127 = vpow2.f32 %v958_v31 }
 0x980   :  { %v1126_v30 = vpop.eup %1125 }
 0x981   :  { %477 = vrot.lane.b32.xlu1 %v1126_v30, %s1335_s25 }
 0x982   :  { %v1128_v32 = vpop.eup %1127 }
 0x983   :  { %v468_v33 = vadd.f32 1.0, %v1128_v32 }
 0x985   :  { %1129 = vrcp.f32 %v468_v33 }
 0x98f   :  { %v1130_v34 = vpop.eup %1129 }
 0x990   :  { %v475_v38 = vmul.f32 %v1130_v34, %v473_v37 }
 0x9f3   :  { %v478_v35 = vpop.permute.xlu1 %477 }
 0x9f4   :  { %v480_v36 = vmul.f32 %v1130_v34, %v478_v35 }
 0x9f6   :  { %482 = vrot.lane.b32.xlu0 %v480_v36, %s1341_s24 }
 0xa68   :  { %v483_v39 = vpop.permute.xlu0 %482 }
 0xa69   :  { %v485_v40 = vadd.f32 %v483_v39, %v475_v38 }
 0xa6b   :  { %1131 = vtanh.f32 %v485_v40  ;;  %v549_v58 = vrot.slane %v485_v40, 6 }
 0xa75   :  { %v1132_v10 = vpop.eup %1131 }
 0xa76   :  { %488 = vrot.lane.b32.xlu1 %v1132_v10, %s1335_s25 }
 0xae8   :  { %v489_v41 = vpop.permute.xlu1 %488 }
 0xae9   :  { %v491_v42 = vmul.f32 %v1130_v34, %v489_v41 }
 0xaeb   :  { %v492_v43 = vpack.c.bf16 %v491_v42, %v491_v42 }
 0xaed   :  { %v494_v44 = vrot.slane %v492_v43, 3 }
 0xaef   :  { %495 = vrot.lane.b32.xlu0 %v494_v44, %s1341_s24 }
 0xb61   :  { %v496_v45 = vpop.permute.xlu0 %495 }
 0xb62   :  { %1046 = vmatmul.mubr.msk.bf16.vlgmr.msra.gmra.mrb[8].mxu1 %vm124_vm1, %v496_v45 }
 0xb63   :  { %1058 = vmatpush3.bf16.msra.mxu1 %v1481_v2  ;;  %1061 = vmatprep.mubr.msk.bf16.mxu1 %vm1340_vm0, %v1339_v0 }
 0xb64   :  { %1059 = vmatprep.subr.bf16.mxu1 %v1339_v0 }
 0xb67   :  { %1060 = vmatpush3.bf16.msra.mxu1 %v1485_v4 }
 0xb68   :  { %1073 = vmatprep.subr.bf16.mxu1 %v1339_v0 }
 0xc35   :  { %v534_v46 = vpop.f32.mrb[8].mxu1 }
 0xc36   :  { %v540_v47 = vadd.f32 %v534_v46, %v1514_v16  ;;  %v1047_v48 = vpop.f32.mrb[9].mxu1 }
 0xc37   :  { %v537_v49 = vpop.f32.mrb[10].mxu1 }
 0xc38   :  { %1133 = vtanh.f32 %v540_v47  ;;  %v1048_v50 = vpop.f32.mrb[11].mxu1  ;;  %v960_v52 = vmul.f32 -1.442695, %v540_v47 }
 0xc3a   :  { %1135 = vpow2.f32 %v960_v52 }
 0xc42   :  { %v1134_v51 = vpop.eup %1133 }
 0xc43   :  { %553 = vrot.lane.b32.xlu1 %v1134_v51, %s1335_s25 }
 0xc44   :  { %v1136_v53 = vpop.eup %1135 }
 0xc45   :  { %v544_v54 = vadd.f32 1.0, %v1136_v53 }
 0xc47   :  { %1137 = vrcp.f32 %v544_v54 }
 0xc51   :  { %v1138_v55 = vpop.eup %1137 }
 0xc52   :  { %v551_v59 = vmul.f32 %v1138_v55, %v549_v58 }
 0xcb5   :  { %v554_v56 = vpop.permute.xlu1 %553 }
 0xcb6   :  { %v556_v57 = vmul.f32 %v1138_v55, %v554_v56 }
 0xcb8   :  { %558 = vrot.lane.b32.xlu0 %v556_v57, %s1341_s24 }
 0xd2a   :  { %v559_v60 = vpop.permute.xlu0 %558 }
 0xd2b   :  { %v561_v61 = vadd.f32 %v559_v60, %v551_v59 }
 0xd2d   :  { %1139 = vtanh.f32 %v561_v61 }
 0xd37   :  { %v1140_v62 = vpop.eup %1139 }
 0xd38   :  { %564 = vrot.lane.b32.xlu1 %v1140_v62, %s1335_s25 }
 0xdaa   :  { %v565_v63 = vpop.permute.xlu1 %564 }
 0xdab   :  { %v567_v1 = vmul.f32 %v1138_v55, %v565_v63 }
 0xdad   :  { %v568_v3 = vpack.c.bf16 %v567_v1, %v567_v1 }
 0xdaf   :  { %570 = vrot.lane.b32.xlu0 %v568_v3, %s1341_s24 }
 0xe21   :  { %v571_v5 = vpop.permute.xlu0 %570 }
 0xe22   :  { %1054 = vmatmul.mubr.msk.bf16.vlgmr.msra.gmra.mrb[12].mxu0 %vm124_vm1, %v571_v5 }
 0xe23   :  { %1066 = vmatpush3.bf16.msra.mxu0 %v1481_v2  ;;  %1069 = vmatprep.mubr.msk.bf16.mxu0 %vm1340_vm0, %v1339_v0 }
 0xe24   :  { %1067 = vmatprep.subr.bf16.mxu0 %v1339_v0 }
 0xe27   :  { %1068 = vmatpush3.bf16.msra.mxu0 %v1485_v4  ;;  %v627_v4 = vrot.slane %v561_v61, 6 }
 0xef5   :  { %v609_v6 = vpop.f32.mrb[12].mxu0 }
 0xef6   :  { %v616_v7 = vrot.slane %v609_v6, 6  ;;  %v1055_v8 = vpop.f32.mrb[13].mxu0 }
 0xef7   :  { %v612_v9 = vpop.f32.mrb[14].mxu0 }
 0xef8   :  { %v618_v11 = vadd.f32 %v616_v7, %v1514_v16  ;;  %v1056_v12 = vpop.f32.mrb[15].mxu0  ;;  %v1100_v7 = vld [vmem:[#allocation8 + $0x8] sm:$0xff]  }
 0xefa   :  { %1141 = vtanh.f32 %v618_v11  ;;  %v962_v14 = vmul.f32 -1.442695, %v618_v11 }
 0xefc   :  { %1143 = vpow2.f32 %v962_v14 }
 0xf04   :  { %v1142_v13 = vpop.eup %1141 }
 0xf05   :  { %631 = vrot.lane.b32.xlu1 %v1142_v13, %s1335_s25 }
 0xf06   :  { %v1144_v2 = vpop.eup %1143 }
 0xf07   :  { %v622_v15 = vadd.f32 1.0, %v1144_v2  ;;  %v967_v2 = vld [vmem:[%s1648_s5] ss:$0 sm:$0xff]  ;;  %s1343_s5 = smov [#allocation11]  }
 0xf08   :  { %s916_s28 = sshll.u32 %s1343_s5, 4  ;;  %s917_s28 = int_to_ptr.vmem [resolvable:$true] %s916_s28 }
 0xf09   :  { %1145 = vrcp.f32 %v622_v15  ;;  %s1257_s11 = scalar_lea.vmem %s917_s28, 32  ;;  %p1262_p5 = scmp.lt.s32.totalorder %s917_s28, %s917_s28 }
 0xf0a   :  { %p1258_p4 = scmp.ne.s32.totalorder %s917_s28, %s1257_s11  ;;  %p1263_p6 = scmp.lt.s32.totalorder %s1257_s11, %s1257_s11 }
 0xf0c   :  { %p1264_p7 = por %p1263_p6, %p1262_p5 }
 0xf0e   :  { %p1265_p8 = pnand %p1264_p7, %p1258_p4 }
 0xf13   :  { %v1146_v17 = vpop.eup %1145 }
 0xf14   :  { %v629_v20 = vmul.f32 %v1146_v17, %v627_v4 }
 0xf77   :  { %v632_v18 = vpop.permute.xlu1 %631 }
 0xf78   :  { %v634_v19 = vmul.f32 %v1146_v17, %v632_v18 }
 0xf7a   :  { %636 = vrot.lane.b32.xlu0 %v634_v19, %s1341_s24 }
 0xfec   :  { %v637_v21 = vpop.permute.xlu0 %636 }
 0xfed   :  { %v639_v22 = vadd.f32 %v637_v21, %v629_v20 }
 0xfef   :  { %1147 = vtanh.f32 %v639_v22  ;;  %v706_v41 = vrot.slane %v639_v22, 6 }
 0xff9   :  { %v1148_v23 = vpop.eup %1147 }
 0xffa   :  { %642 = vrot.lane.b32.xlu1 %v1148_v23, %s1335_s25 }
0x106c   :  { %v643_v24 = vpop.permute.xlu1 %642 }
0x106d   :  { %v645_v25 = vmul.f32 %v1146_v17, %v643_v24 }
0x106f   :  { %v646_v26 = vpack.c.bf16 %v645_v25, %v645_v25 }
0x1071   :  { %v648_v27 = vrot.slane %v646_v26, 1 }
0x1073   :  { %649 = vrot.lane.b32.xlu0 %v648_v27, %s1341_s24 }
0x10e5   :  { %v650_v28 = vpop.permute.xlu0 %649 }
0x10e6   :  { %1062 = vmatmul.mubr.msk.bf16.vlgmr.msra.gmra.mrb[12].mxu1 %vm124_vm1, %v650_v28 }
0x10e7   :  { %1077 = vmatprep.mubr.msk.bf16.mxu1 %vm1340_vm0, %v1339_v0 }
0x11b9   :  { %v688_v29 = vpop.f32.mrb[12].mxu1 }
0x11ba   :  { %v695_v30 = vrot.slane %v688_v29, 4  ;;  %v1063_v31 = vpop.f32.mrb[13].mxu1 }
0x11bb   :  { %v691_v32 = vpop.f32.mrb[14].mxu1 }
0x11bc   :  { %v697_v33 = vadd.f32 %v695_v30, %v1514_v16  ;;  %v1064_v34 = vpop.f32.mrb[15].mxu1 }
0x11be   :  { %1149 = vtanh.f32 %v697_v33  ;;  %v964_v36 = vmul.f32 -1.442695, %v697_v33 }
0x11c0   :  { %1151 = vpow2.f32 %v964_v36 }
0x11c8   :  { %v1150_v35 = vpop.eup %1149 }
0x11c9   :  { %710 = vrot.lane.b32.xlu1 %v1150_v35, %s1335_s25 }
0x11ca   :  { %v1152_v37 = vpop.eup %1151 }
0x11cb   :  { %v701_v38 = vadd.f32 1.0, %v1152_v37 }
0x11cd   :  { %1153 = vrcp.f32 %v701_v38 }
0x11d7   :  { %v1154_v39 = vpop.eup %1153 }
0x11d8   :  { %v708_v42 = vmul.f32 %v1154_v39, %v706_v41 }
0x123b   :  { %v711_v40 = vpop.permute.xlu1 %710 }
0x123c   :  { %v713_v10 = vmul.f32 %v1154_v39, %v711_v40 }
0x123e   :  { %715 = vrot.lane.b32.xlu0 %v713_v10, %s1341_s24 }
0x12b0   :  { %v716_v43 = vpop.permute.xlu0 %715 }
0x12b1   :  { %v718_v44 = vadd.f32 %v716_v43, %v708_v42 }
0x12b3   :  { %1155 = vtanh.f32 %v718_v44  ;;  %v785_v1 = vrot.slane %v718_v44, 6 }
0x12bd   :  { %v1156_v45 = vpop.eup %1155 }
0x12be   :  { %721 = vrot.lane.b32.xlu1 %v1156_v45, %s1335_s25 }
0x1330   :  { %v722_v46 = vpop.permute.xlu1 %721 }
0x1331   :  { %v724_v47 = vmul.f32 %v1154_v39, %v722_v46 }
0x1333   :  { %v725_v48 = vpack.c.bf16 %v724_v47, %v724_v47 }
0x1335   :  { %v727_v49 = vrot.slane %v725_v48, 2 }
0x1337   :  { %728 = vrot.lane.b32.xlu0 %v727_v49, %s1341_s24 }
0x13a9   :  { %v729_v50 = vpop.permute.xlu0 %728 }
0x13aa   :  { %1070 = vmatmul.mubr.msk.bf16.vlgmr.msra.gmra.mrb[16].mxu0 %vm124_vm1, %v729_v50 }
0x147d   :  { %v767_v51 = vpop.f32.mrb[16].mxu0 }
0x147e   :  { %v774_v52 = vrot.slane %v767_v51, 2  ;;  %v1071_v53 = vpop.f32.mrb[17].mxu0 }
0x147f   :  { %v770_v54 = vpop.f32.mrb[18].mxu0 }
0x1480   :  { %v776_v55 = vadd.f32 %v774_v52, %v1514_v16  ;;  %v1072_v56 = vpop.f32.mrb[19].mxu0  ;;  %v1099_v16 = vld [vmem:[#allocation8] sm:$0xff]  }
0x1481   :  { %1074 = vmatpush3.bf16.msra.mxu1 %v1099_v16 }
0x1482   :  { %1157 = vtanh.f32 %v776_v55  ;;  %v966_v58 = vmul.f32 -1.442695, %v776_v55  ;;  %1075 = vmatprep.subr.bf16.mxu1 %v1339_v0 }
0x1484   :  { %1159 = vpow2.f32 %v966_v58 }
0x1485   :  { %1076 = vmatpush3.bf16.msra.mxu1 %v1100_v7 }
0x148c   :  { %v1158_v57 = vpop.eup %1157 }
0x148d   :  { %789 = vrot.lane.b32.xlu1 %v1158_v57, %s1335_s25 }
0x148e   :  { %v1160_v59 = vpop.eup %1159 }
0x148f   :  { %v780_v60 = vadd.f32 1.0, %v1160_v59 }
0x1491   :  { %1161 = vrcp.f32 %v780_v60 }
0x149b   :  { %v1162_v61 = vpop.eup %1161 }
0x149c   :  { %v787_v3 = vmul.f32 %v1162_v61, %v785_v1 }
0x14ff   :  { %v790_v62 = vpop.permute.xlu1 %789 }
0x1500   :  { %v792_v63 = vmul.f32 %v1162_v61, %v790_v62 }
0x1502   :  { %794 = vrot.lane.b32.xlu0 %v792_v63, %s1341_s24 }
0x1574   :  { %v795_v5 = vpop.permute.xlu0 %794 }
0x1575   :  { %v797_v6 = vadd.f32 %v795_v5, %v787_v3 }
0x1577   :  { %1163 = vtanh.f32 %v797_v6 }
0x1581   :  { %v1164_v8 = vpop.eup %1163 }
0x1582   :  { %800 = vrot.lane.b32.xlu1 %v1164_v8, %s1335_s25  ;;  %s1342_s25 = smov 96  }
0x15f4   :  { %v801_v9 = vpop.permute.xlu1 %800 }
0x15f5   :  { %v803_v11 = vmul.f32 %v1162_v61, %v801_v9 }
0x15f7   :  { %v804_v12 = vpack.c.bf16 %v803_v11, %v803_v11 }
0x15f9   :  { %v817_v13 = vrot.slane %v804_v12, 3 }
0x15fb   :  { %818 = vrot.lane.b32.xlu0 %v817_v13, %s1341_s24 }
0x166d   :  { %v819_v14 = vpop.permute.xlu0 %818 }
0x166e   :  { %1078 = vmatmul.mubr.msk.bf16.vlgmr.msra.gmra.mrb[16].mxu1 %vm124_vm1, %v819_v14 }
0x1741   :  { %v869_v15 = vpop.f32.mrb[16].mxu1 }
0x1742   :  { %v870_v0 = vadd.f32 %v967_v2, %v869_v15  ;;  %v1079_v17 = vpop.f32.mrb[17].mxu1 }
0x1743   :  { %v872_v18 = vpop.f32.mrb[18].mxu1 }
0x1744   :  { %v1080_v19 = vpop.f32.mrb[19].mxu1  ;;  %v876_v4 = vsel %vm875_vm2, %v870_v0, -inf }
0x1745   :  { %877 = vmax.xlane.f32.xlu1 %v876_v4 }
0x1756   :  { %896 = vrot.lane.b32.xlu1 %v797_v6, %s1342_s25 }
0x17d2   :  { %v878_v20 = vpop.xlane.xlu1 %877 }
0x17d3   :  { %v879_v21 = vsub.f32 %v870_v0, %v878_v20 }
0x17d5   :  { %v880_v22 = vmul.f32 1.442695, %v879_v21 }
0x17d6   :  { %v897_v23 = vpop.permute.xlu1 %896 }
0x17d7   :  { %1165 = vpow2.f32 %v880_v22  ;;  %899 = vst.msk [vmem:[#allocation13 - $0x6] sm:$0xc0] %vm893_vm3, %v897_v23 }
0x17e1   :  { %v1166_v24 = vpop.eup %1165 }
0x17e2   :  { %v882_v25 = vsel %vm875_vm2, %v1166_v24, 0.0 }
0x17e3   :  { %883 = vadd.xlane.f32.xlu0 %v882_v25 }
0x17f9   :  { %890 = vrot.lane.b32.xlu0 %v803_v11, %s1341_s24 }
0x1870   :  { %v884_v26 = vpop.xlane.xlu0 %883 }
0x1871   :  { %1167 = vlog2.f32 %v884_v26 }
0x1874   :  { %v891_v27 = vpop.permute.xlu0 %890 }
0x1875   :  { %894 = vst.msk [vmem:[#allocation11 - $0x6] sm:$0xc0] %vm893_vm3, %v891_v27 }
0x1876   :  { %1268 = shalt.err (!%p1265_p8)
}
0x1877   :  { %s1269_s12 = scalar_lea.hbm %s1652_s9, 32 }
0x1878   :  { %p1270_p9 = scmp.ne.s32.totalorder %s1652_s9, %s1269_s12  ;;  %p1273_p10 = scmp.lt.u32.totalorder %s1269_s12, %s1652_s9 }
0x187a   :  { %p1275_p11 = pnand %p1273_p10, %p1270_p9 }
0x187c   :  { %1278 = shalt.err (!%p1275_p11)
}
0x187d   :  { %919 = dma.vmem_to_hbm [thread:$0]  %s917_s28, 32, %s1652_s9, [#allocation12]  }
0x187e   :  { %s1279_s19 = scalar_lea.vmem %s927_s30, 32  ;;  %p1284_p13 = scmp.lt.s32.totalorder %s927_s30, %s927_s30 }
0x187f   :  { %p1280_p12 = scmp.ne.s32.totalorder %s927_s30, %s1279_s19  ;;  %p1285_p0 = scmp.lt.s32.totalorder %s1279_s19, %s1279_s19 }
0x1881   :  { %p1286_p1 = por %p1285_p0, %p1284_p13 }
0x1883   :  { %p1287_p2 = pnand %p1286_p1, %p1280_p12 }
0x1885   :  { %1290 = shalt.err (!%p1287_p2)
}
0x1886   :  { %s1291_s20 = scalar_lea.hbm %s1653_s10, 32 }
0x1887   :  { %p1292_p3 = scmp.ne.s32.totalorder %s1653_s10, %s1291_s20  ;;  %p1295_p4 = scmp.lt.u32.totalorder %s1291_s20, %s1653_s10 }
0x1889   :  { %p1297_p5 = pnand %p1295_p4, %p1292_p3 }
0x188b   :  { %1300 = shalt.err (!%p1297_p5)
}
0x188c   :  { %929 = dma.vmem_to_hbm [thread:$0]  %s927_s30, 32, %s1653_s10, [#allocation12]   ;;  %v1168_v28 = vpop.eup %1167 }
0x188d   :  { %s1345_s3 = smov [#allocation10]   ;;  %v886_v29 = vmul.f32 0.6931472, %v1168_v28 }
0x188e   :  { %s906_s24 = sshll.u32 %s1345_s3, 4  ;;  %s907_s24 = int_to_ptr.vmem [resolvable:$true] %s906_s24 }
0x188f   :  { %v887_v30 = vsub.f32 %v879_v21, %v886_v29  ;;  %s1301_s7 = scalar_lea.vmem %s907_s24, 32  ;;  %p1306_p7 = scmp.lt.s32.totalorder %s907_s24, %s907_s24 }
0x1890   :  { %p1302_p6 = scmp.ne.s32.totalorder %s907_s24, %s1301_s7  ;;  %p1307_p8 = scmp.lt.s32.totalorder %s1301_s7, %s1301_s7 }
0x1891   :  { %888 = vst [vmem:[#allocation10] sm:$0x3] %v887_v30 }
0x1892   :  { %p1308_p9 = por %p1307_p8, %p1306_p7 }
0x1894   :  { %p1309_p10 = pnand %p1308_p9, %p1302_p6 }
0x1896   :  { %1312 = shalt.err (!%p1309_p10)
}
0x1897   :  { %s1313_s5 = scalar_lea.hbm %s1651_s8, 32 }
0x1898   :  { %p1314_p11 = scmp.ne.s32.totalorder %s1651_s8, %s1313_s5  ;;  %p1317_p12 = scmp.lt.u32.totalorder %s1313_s5, %s1651_s8 }
0x189a   :  { %p1319_p13 = pnand %p1317_p12, %p1314_p11 }
0x189c   :  { %1322 = shalt.err (!%p1319_p13)
}
0x189d   :  { %909 = dma.vmem_to_hbm [thread:$0]  %s907_s24, 32, %s1651_s8, [#allocation4]  }
0x189e   :  { %1329 = dma.done.wait [#allocation4], 32  }
0x189f   :  { %1330 = vsyncadd [#allocation4], 4294967264 }
0x18a0   :  { %1331 = dma.done.wait [#allocation12], 64  }
0x18a1   :  { %1332 = vsyncadd [#allocation12], 4294967232 }
0x18a2   :  { %939 = vsyncpa [#allocation3], 1 }
0x18a3   :  { %940 = vsyncpa [#allocation6], 1 }
0x18a4   :  { %941 = vsyncpa [#allocation9], 1 }
0x18a5   :  { %942 = vsyncpa [#allocation4], 1 }
0x18a6   :  { %943 = vsyncpa [#allocation12], 1 }

</bundles_post_ra>
